<compile_context>
chip_gen: v7x
topology: tpu7x:2x2x1
jax: 0.10.0
libtpu: 0.0.40
codegen_flags: <defaults>
</compile_context>

<pallas_src>
import functools

import jax
import jax.numpy as jnp
from jax import lax
from jax.experimental import pallas as pl
from jax.experimental.pallas import tpu as pltpu


def _lsce_kernel(x_ref, t_ref, out_ref, *, smoothing, n_total):
    # x_ref: (TN, C) logits (native dtype), t_ref: (TN, 1) int32 targets,
    # out_ref: (1, 8, 128) f32 per-tile partial-sum block.
    i = pl.program_id(0)

    x = x_ref[...]                                  # keep native dtype (bf16 stays bf16)
    rows, c = x.shape

    # Row max in the native dtype (exact), then f32 for the log-sum-exp path.
    x_max = jnp.max(x, axis=-1, keepdims=True).astype(jnp.float32)        # (TN, 1)

    # Stable logsumexp; (x_f32 - x_max) has exactly one consumer (exp), so it
    # fuses into the EUP input instead of living as a (TN, C) VMEM temp.
    sum_exp = jnp.sum(jnp.exp(x.astype(jnp.float32) - x_max),
                      axis=-1, keepdims=True)                             # (TN, 1)
    lse = x_max + jnp.log(sum_exp)                                        # (TN, 1)

    # One-hot mask of the target column (no dynamic gather on TPU).
    col_ids = lax.broadcasted_iota(jnp.int32, (rows, c), 1)
    onehot = col_ids == t_ref[...]                                        # (TN, C)

    if jnp.dtype(x.dtype).itemsize < 4:
        # bf16/fp16 path: row reductions on the idle MXU, accumulating in f32.
        masked = jnp.where(onehot, x, jnp.zeros((), x.dtype))             # native dtype
        ones = jnp.ones((c, 128), dtype=x.dtype)
        row_sum = jnp.dot(x, ones, preferred_element_type=jnp.float32)[:, :1]
        x_t = jnp.dot(masked, ones, preferred_element_type=jnp.float32)[:, :1]
    else:
        # f32 path (memory-bound anyway): exact VPU reductions in f32.
        row_sum = jnp.sum(x, axis=-1, keepdims=True)
        x_t = jnp.sum(jnp.where(onehot, x, 0.0), axis=-1, keepdims=True)

    confidence = 1.0 - smoothing
    loss_row = lse - confidence * x_t - (smoothing / c) * row_sum         # (TN, 1)

    # Zero padded rows of a ragged last tile.  Keep this a select (NOT a
    # multiply-by-zero): padded rows may hold inf/NaN garbage.
    row_ids = i * rows + lax.broadcasted_iota(jnp.int32, (rows, 1), 0)
    loss_row = jnp.where(row_ids < n_total, loss_row, 0.0)

    # Lane-dense unmasked store of the per-tile partial sum (one vreg).
    out_ref[...] = jnp.full(out_ref.shape, jnp.sum(loss_row), dtype=jnp.float32)


def _round_up(a, b):
    return ((a + b - 1) // b) * b


def _cdiv(a, b):
    return (a + b - 1) // b


def _vmem_plan(dtype):
    """Per-generation (logits-tile byte budget, scoped VMEM limit)."""
    itemsize = jnp.dtype(dtype).itemsize
    try:
        vmem_cap = pltpu.get_tpu_info().vmem_capacity_bytes
    except Exception:
        vmem_cap = 64 * 1024 * 1024          # unknown -> assume smallest (v7x-class)
    if vmem_cap <= 64 * 1024 * 1024:
        # v7x-class: 64 MiB physical VMEM -> small tiles, default scoped limit.
        return 2 * 1024 * 1024, 32 * 1024 * 1024
    # v5e / v6e-class: 128 MiB physical VMEM -> bigger tiles + bigger limit
    # (larger tiles are the dominant lever on the HBM-bound f32/v5e path).
    budget = (8 if itemsize >= 4 else 4) * 1024 * 1024
    return budget, 64 * 1024 * 1024


def _choose_tile_rows(n, c, dtype, budget):
    itemsize = jnp.dtype(dtype).itemsize
    sub = {4: 8, 2: 16, 1: 32}.get(itemsize, 8)      # sublane granularity
    tn = budget // max(1, c * itemsize)
    tn = max(sub, (tn // sub) * sub)
    tn = min(tn, 1024)
    n_pad = _round_up(n, sub)
    tn = min(tn, n_pad)
    # Prefer >= 2 tiles so the "parallel" axis splits across both v7x TCs.
    while _cdiv(n, tn) < 2 and tn > sub:
        tn = max(sub, _round_up(tn // 2, sub))
    # Mild nudge towards an even tile count (TC load balance on v7x).
    tiles = _cdiv(n, tn)
    if tiles > 1 and tiles % 2 == 1:
        cand = tn - sub
        while cand >= sub:
            if _cdiv(n, cand) % 2 == 0:
                tn = cand
                break
            cand -= sub
    return tn


def label_smoothing_cross_entropy(x, target, smoothing=0.1):
    """x: (N, C) float logits (f32/bf16), target: (N,) ints. Returns scalar f32."""
    n, c = x.shape
    t2 = target.astype(jnp.int32).reshape(n, 1)

    budget, vmem_limit = _vmem_plan(x.dtype)
    tn = _choose_tile_rows(n, c, x.dtype, budget)
    num_tiles = _cdiv(n, tn)
    itemsize = jnp.dtype(x.dtype).itemsize

    cost = pl.CostEstimate(
        flops=8 * n * c,
        transcendentals=n * c,
        bytes_accessed=n * c * itemsize + n * 4 + num_tiles * 8 * 128 * 4,
    )

    partials = pl.pallas_call(
        functools.partial(_lsce_kernel, smoothing=float(smoothing), n_total=n),
        out_shape=jax.ShapeDtypeStruct((num_tiles, 8, 128), jnp.float32),
        grid=(num_tiles,),
        in_specs=[
            # TODO(synk): if profiling shows the logits DMA exposed on the
            # f32/v5e path, add pipeline_mode=pl.Buffered(3) to this spec.
            pl.BlockSpec((tn, c), lambda i: (i, 0)),
            pl.BlockSpec((tn, 1), lambda i: (i, 0)),
        ],
        out_specs=pl.BlockSpec((1, 8, 128), lambda i: (i, 0, 0)),
        compiler_params=pltpu.CompilerParams(
            dimension_semantics=("parallel",),
            vmem_limit_bytes=vmem_limit,
        ),
        cost_estimate=cost,
    )(x, t2)

    # Tiny epilogue in plain JAX: sum per-tile partials, divide by the true N.
    return jnp.sum(partials[:, 0, 0]) / jnp.float32(n)


def _reference(x, target, smoothing=0.1):
    # Pure-JAX reference mirroring the PyTorch forward exactly.
    confidence = 1.0 - smoothing
    logprobs = jax.nn.log_softmax(x.astype(jnp.float32), axis=-1)
    idx = target.astype(jnp.int32)[:, None]
    nll_loss = -jnp.take_along_axis(logprobs, idx, axis=-1)[:, 0]
    smooth_loss = -jnp.mean(logprobs, axis=-1)
    loss = confidence * nll_loss + smoothing * smooth_loss
    return jnp.mean(loss)


if __name__ == "__main__":
    key = jax.random.PRNGKey(0)
    k1, k2, k3, k4, k5, k6 = jax.random.split(key, 6)

    # Test 1: small f32 logits (exact VPU-reduction path), N multiple of sublane.
    N, C = 8, 32
    x = jax.random.normal(k1, (N, C), dtype=jnp.float32)
    t = jax.random.randint(k2, (N,), 0, C, dtype=jnp.int32)
    loss = jax.block_until_ready(label_smoothing_cross_entropy(x, t, 0.1))
    ref = _reference(x, t, 0.1)
    assert jnp.allclose(loss, ref, atol=1e-4, rtol=1e-4), (loss, ref)

    # Test 2: bf16 logits, ragged N (last-tile masking + MXU-reduction path).
    N2, C2 = 13, 160
    x2 = jax.random.normal(k3, (N2, C2), dtype=jnp.bfloat16)
    t2 = jax.random.randint(k4, (N2,), 0, C2, dtype=jnp.int32)
    loss2 = jax.block_until_ready(label_smoothing_cross_entropy(x2, t2, 0.1))
    ref2 = _reference(x2, t2, 0.1)
    assert jnp.allclose(loss2, ref2, atol=1e-3, rtol=1e-3), (loss2, ref2)

    # Test 3: bf16, ragged N, multi-tile grid (exercises the >=2-tile split,
    # accumulator-free per-tile partials, and the MXU reductions together).
    N3, C3 = 300, 512
    x3 = jax.random.normal(k5, (N3, C3), dtype=jnp.bfloat16)
    t3 = jax.random.randint(k6, (N3,), 0, C3, dtype=jnp.int32)
    loss3 = jax.block_until_ready(label_smoothing_cross_entropy(x3, t3, 0.1))
    ref3 = _reference(x3, t3, 0.1)
    assert jnp.allclose(loss3, ref3, atol=1e-3, rtol=1e-3), (loss3, ref3)

    print("KERNEL_OK")
</pallas_src>

<mosaic_0001>
module attributes {stable_mosaic.version = 11 : i64} {
  func.func @_lsce_kernel(%arg0: i32, %arg1: memref<8x32xf32, #tpu.memory_space<vmem>>, %arg2: memref<8x1xi32, #tpu.memory_space<vmem>>, %arg3: memref<1x8x128xf32, #tpu.memory_space<vmem>>) attributes {dimension_semantics = [#tpu.dimension_semantics<parallel>], iteration_bounds = array<i64: 1>, scalar_prefetch = 0 : i64, scratch_operands = 0 : i64, tpu.core_type = #tpu.core_type<tc>, window_params = [{transform_indices = @transform_0, window_bounds = array<i64: 8, 32>}, {transform_indices = @transform_1, window_bounds = array<i64: 8, 1>}, {transform_indices = @transform_2, window_bounds = array<i64: 1, 8, 128>}]} {
    %c0 = arith.constant 0 : index
    %c0_0 = arith.constant 0 : index
    %0 = vector.load %arg1[%c0, %c0_0] : memref<8x32xf32, #tpu.memory_space<vmem>>, vector<8x32xf32>
    %cst = arith.constant dense<0xFF800000> : vector<8xf32>
    %1 = vector.multi_reduction <maximumf>, %0, %cst [1] : vector<8x32xf32> to vector<8xf32>
    %2 = vector.shape_cast %1 : vector<8xf32> to vector<8x1xf32>
    %3 = vector.broadcast %2 : vector<8x1xf32> to vector<8x32xf32>
    %4 = arith.subf %0, %3 : vector<8x32xf32>
    %5 = math.exp %4 : vector<8x32xf32>
    %cst_1 = arith.constant dense<0.000000e+00> : vector<8xf32>
    %6 = vector.multi_reduction <add>, %5, %cst_1 [1] : vector<8x32xf32> to vector<8xf32>
    %7 = vector.shape_cast %6 : vector<8xf32> to vector<8x1xf32>
    %8 = math.log %7 : vector<8x1xf32>
    %9 = arith.addf %2, %8 : vector<8x1xf32>
    %10 = tpu.iota {dimensions = array<i32: 1>} : vector<8x32xi32>
    %c0_2 = arith.constant 0 : index
    %c0_3 = arith.constant 0 : index
    %11 = vector.load %arg2[%c0_2, %c0_3] : memref<8x1xi32, #tpu.memory_space<vmem>>, vector<8x1xi32>
    %12 = vector.broadcast %11 : vector<8x1xi32> to vector<8x32xi32>
    %13 = arith.cmpi eq, %10, %12 : vector<8x32xi32>
    %cst_4 = arith.constant dense<0.000000e+00> : vector<8xf32>
    %14 = vector.multi_reduction <add>, %0, %cst_4 [1] : vector<8x32xf32> to vector<8xf32>
    %15 = vector.shape_cast %14 : vector<8xf32> to vector<8x1xf32>
    %cst_5 = arith.constant 0.000000e+00 : f32
    %16 = vector.broadcast %cst_5 : f32 to vector<8x32xf32>
    %17 = arith.select %13, %0, %16 : vector<8x32xi1>, vector<8x32xf32>
    %cst_6 = arith.constant dense<0.000000e+00> : vector<8xf32>
    %18 = vector.multi_reduction <add>, %17, %cst_6 [1] : vector<8x32xf32> to vector<8xf32>
    %19 = vector.shape_cast %18 : vector<8xf32> to vector<8x1xf32>
    %cst_7 = arith.constant 0.899999976 : f32
    %20 = vector.broadcast %cst_7 : f32 to vector<8x1xf32>
    %21 = arith.mulf %20, %19 : vector<8x1xf32>
    %22 = arith.subf %9, %21 : vector<8x1xf32>
    %cst_8 = arith.constant 3.125000e-03 : f32
    %23 = vector.broadcast %cst_8 : f32 to vector<8x1xf32>
    %24 = arith.mulf %23, %15 : vector<8x1xf32>
    %25 = arith.subf %22, %24 : vector<8x1xf32>
    %c8_i32 = arith.constant 8 : i32
    %26 = arith.muli %arg0, %c8_i32 : i32
    %27 = tpu.iota {dimensions = array<i32: 0>} : vector<8x1xi32>
    %28 = vector.broadcast %26 : i32 to vector<8x1xi32>
    %29 = arith.addi %28, %27 : vector<8x1xi32>
    %c8_i32_9 = arith.constant 8 : i32
    %30 = vector.broadcast %c8_i32_9 : i32 to vector<8x1xi32>
    %31 = arith.cmpi slt, %29, %30 : vector<8x1xi32>
    %cst_10 = arith.constant 0.000000e+00 : f32
    %32 = vector.broadcast %cst_10 : f32 to vector<8x1xf32>
    %33 = arith.select %31, %25, %32 : vector<8x1xi1>, vector<8x1xf32>
    %34 = vector.shape_cast %33 : vector<8x1xf32> to vector<1x8x1xf32>
    %cst_11 = arith.constant dense<0.000000e+00> : vector<1xf32>
    %35 = vector.multi_reduction <add>, %34, %cst_11 [1, 2] : vector<1x8x1xf32> to vector<1xf32>
    %36 = vector.shape_cast %35 : vector<1xf32> to vector<1x1x1xf32>
    %37 = vector.extract %36[0, 0, 0] : f32 from vector<1x1x1xf32>
    %38 = vector.broadcast %37 : f32 to vector<1x8x128xf32>
    %c0_12 = arith.constant 0 : index
    %c0_13 = arith.constant 0 : index
    %c0_14 = arith.constant 0 : index
    %39 = vector.load %arg3[%c0_12, %c0_13, %c0_14] : memref<1x8x128xf32, #tpu.memory_space<vmem>>, vector<1x8x128xf32>
    tpu.vector_store %arg3[%c0_12, %c0_13, %c0_14], %38 {strides = array<i32>} : memref<1x8x128xf32, #tpu.memory_space<vmem>>, vector<1x8x128xf32>,
    return
  }
  func.func @transform_0(%arg0: i32) -> (i32, i32) {
    %c0_i32 = arith.constant 0 : i32
    %c0_i32_0 = arith.constant 0 : i32
    return %arg0, %c0_i32 : i32, i32
  }
  func.func @transform_1(%arg0: i32) -> (i32, i32) {
    %c0_i32 = arith.constant 0 : i32
    %c0_i32_0 = arith.constant 0 : i32
    return %arg0, %c0_i32 : i32, i32
  }
  func.func @transform_2(%arg0: i32) -> (i32, i32, i32) {
    %c0_i32 = arith.constant 0 : i32
    %c0_i32_0 = arith.constant 0 : i32
    %c0_i32_1 = arith.constant 0 : i32
    return %arg0, %c0_i32, %c0_i32_0 : i32, i32, i32
  }
}

</mosaic_0001>

<bundles_post_ra>
// kernel: tpu_custom_call.1
= control target key start
LH: loop header
LB: loop body
LE: loop exit
PB: predicated region body
PF: predicated region fallthrough
CT: control target
= control target key end

     0   :  { %vm13_vm0 = vcmask 261120   ;;  %s150_s0 = inlined_call_operand.vmem [shape: f32[8,32], index: 0, kind: input, shape index: {}]   ;;  %s151_s1 = inlined_call_operand.vmem [shape: s32[8,1], index: 1, kind: input, shape index: {}]   ;;  %s152_s2 = inlined_call_operand.hbm [shape: f32[1,8,128], index: 2, kind: output, shape index: {}]  }
   0x1   :  { %v12_v0 = vld [vmem:[%s150_s0] sm:$0xff] }
   0x2   :  { %7 = vsyncpa [#allocation3], 0  ;;  %v14_v1 = vsel %vm13_vm0, %v12_v0, -inf  ;;  %v111_v2 = vmov 0   ;;  %v28_v3 = vld [vmem:[%s151_s1] sm:$0xff]  ;;  %v26_v7 = vlaneseq  ;;  %v33_v14 = vsel %vm13_vm0, %v12_v0, 0.0 }
   0x3   :  { %82 = vset.pattern.permute.xlu0 %v111_v2  ;;  %vm51_vm2 = vcmask 7168   ;;  %s112_s0 = smov [#allocation2]  }
   0x4   :  { %15 = vmax.xlane.f32.xlu0 %v14_v1  ;;  %v27_v8 = vand.u32 127, %v26_v7  ;;  %s70_s1 = sshll.u32 %s112_s0, 4  ;;  %s71_s1 = int_to_ptr.vmem [resolvable:$true] %s70_s1 }
   0x5   :  { %s87_s14 = scalar_lea.vmem %s71_s1, 128  ;;  %p92_p1 = scmp.lt.s32.totalorder %s71_s1, %s71_s1 }
   0x6   :  { %p88_p0 = scmp.ne.s32.totalorder %s71_s1, %s87_s14  ;;  %p93_p2 = scmp.lt.s32.totalorder %s87_s14, %s87_s14 }
   0x8   :  { %p94_p3 = por %p93_p2, %p92_p1 }
   0xa   :  { %p95_p4 = pnand %p94_p3, %p88_p0 }
  0x1a   :  { %30 = vperm.xlu0 %82, %v28_v3  }
  0x91   :  { %v16_v4 = vpop.xlane.xlu0 %15 }
  0x92   :  { %v17_v5 = vsub.f32 %v12_v0, %v16_v4 }
  0x94   :  { %v18_v6 = vmul.f32 1.442695, %v17_v5 }
  0x96   :  { %83 = vpow2.f32 %v18_v6 }
  0x99   :  { %v31_v9 = vpop.permute.xlu0 %30 }
  0x9a   :  { %vm32_vm1 = vcmp.eq.s32.totalorder %v27_v8, %v31_v9 }
  0x9b   :  { %v36_v11 = vsel %vm32_vm1, %v12_v0, 0.0 }
  0x9c   :  { %v37_v13 = vsel %vm13_vm0, %v36_v11, 0.0 }
  0xa0   :  { %v84_v10 = vpop.eup %83 }
  0xa1   :  { %v20_v12 = vsel %vm13_vm0, %v84_v10, 0.0 }
  0xa2   :  { %21 = vadd.xlane.f32.xlu1 %v20_v12 }
  0xa6   :  { %38 = vadd.xlane.f32.xlu1 %v37_v13 }
  0xaa   :  { %34 = vadd.xlane.f32.xlu1 %v33_v14 }
 0x12f   :  { %v22_v15 = vpop.xlane.xlu1 %21 }
 0x130   :  { %85 = vlog2.f32 %v22_v15 }
 0x133   :  { %v39_v16 = vpop.xlane.xlu1 %38 }
 0x134   :  { %v40_v21 = vmul.f32 0.9, %v39_v16 }
 0x137   :  { %v35_v18 = vpop.xlane.xlu1 %34 }
 0x138   :  { %v42_v22 = vmul.f32 0.003125, %v35_v18 }
 0x13a   :  { %v86_v17 = vpop.eup %85 }
 0x13b   :  { %v24_v19 = vmul.f32 0.6931472, %v86_v17 }
 0x13d   :  { %v25_v20 = vadd.f32 %v24_v19, %v16_v4 }
 0x13f   :  { %v41_v23 = vsub.f32 %v25_v20, %v40_v21 }
 0x141   :  { %v43_v24 = vsub.f32 %v41_v23, %v42_v22 }
 0x143   :  { %v52_v25 = vsel %vm51_vm2, %v43_v24, 0.0 }
 0x144   :  { %53 = vadd.xlane.f32.xlu1 %v52_v25 }
 0x1d1   :  { %v54_v26 = vpop.xlane.xlu1 %53 }
 0x1d2   :  { %v55_v27 = vrot.slane %v54_v26, 4 }
 0x1d4   :  { %v56_v28 = vadd.f32 %v55_v27, %v54_v26 }
 0x1d6   :  { %v57_v29 = vrot.slane %v56_v28, 2 }
 0x1d8   :  { %v58_v30 = vadd.f32 %v57_v29, %v56_v28 }
 0x1da   :  { %v59_v31 = vrot.slane %v58_v30, 1 }
 0x1dc   :  { %v60_v32 = vadd.f32 %v59_v31, %v58_v30 }
 0x1de   :  { %78 = vpush %v60_v32 }
 0x20f   :  { %s79_s13 = spop %78 }
 0x210   :  { %v62_v33 = vstv %s79_s13 }
 0x211   :  { %63 = vst [vmem:[#allocation2] sm:$0xff] %v62_v33 }
 0x212   :  { %98 = shalt.err (!%p95_p4)
}
 0x213   :  { %s99_s17 = scalar_lea.hbm %s152_s2, 128 }
 0x214   :  { %p100_p5 = scmp.ne.s32.totalorder %s152_s2, %s99_s17  ;;  %p103_p6 = scmp.lt.u32.totalorder %s99_s17, %s152_s2 }
 0x216   :  { %p105_p7 = pnand %p103_p6, %p100_p5 }
 0x218   :  { %108 = shalt.err (!%p105_p7)
}
 0x219   :  { %73 = dma.vmem_to_hbm [thread:$0]  %s71_s1, 128, %s152_s2, [#allocation3]  }
 0x21a   :  { %109 = dma.done.wait [#allocation3], 128  }
 0x21b   :  { %110 = vsyncadd [#allocation3], 4294967168 }
 0x21c   :  { %77 = vsyncpa [#allocation3], 1 }

</bundles_post_ra>
